<compile_context>
chip_gen: v6e
topology: v6e:2x2x1
jax: 0.10.0
libtpu: 0.0.40
codegen_flags: <defaults>
</compile_context>

<pallas_src>
import jax
import jax.numpy as jnp
from jax import lax
from jax.experimental import pallas as pl
from jax.experimental.pallas import tpu as pltpu

_LANES = 128
_SUBLANES = 8
_CHUNK_ROWS = 512          # inner accumulation chunk (rows); keeps temporaries small


def _round_up(x: int, m: int) -> int:
    return ((x + m - 1) // m) * m


def _default_outer_split() -> int:
    """2-way outer split (one row range per TensorCore) only on 2-TC chips (v7x)."""
    try:
        kind = jax.devices()[0].device_kind.lower()
    except Exception:
        return 1
    return 2 if ("v7" in kind or "7x" in kind) else 1


def _make_kernel(tile_rows: int, rows_valid: int, n_inner: int, chunk: int):
    n_full = tile_rows // chunk
    rem = tile_rows - n_full * chunk        # multiple of 8

    def _partial(mask_ref, pred_ref, gt_ref, iota_rows, r0, nrows, rows_left):
        """(8,128) f32 partial sums over `nrows` rows starting at ref-row r0."""
        valid = iota_rows < rows_left       # rows past the real data are garbage
        m = mask_ref[pl.ds(r0, nrows), :]
        if m.dtype != jnp.bool_:
            m = m != 0
        p = pred_ref[pl.ds(r0, nrows), :].astype(jnp.float32)
        g = gt_ref[pl.ds(r0, nrows), :].astype(jnp.float32)
        d = p - g
        sq = d * d
        m_obj = jnp.logical_and(valid, m)
        m_back = jnp.logical_and(valid, jnp.logical_not(m))
        obj = jnp.where(m_obj, sq, 0.0)
        back = jnp.where(m_back, sq, 0.0)
        cnt = m_obj.astype(jnp.float32)

        def vsum(x):   # (R,128)->(R/8,8,128) is layout preserving: pure VPU adds
            return jnp.sum(x.reshape(nrows // _SUBLANES, _SUBLANES, _LANES), axis=0)

        return vsum(obj), vsum(back), vsum(cnt)

    def kernel(mask_ref, pred_ref, gt_ref, out_ref):
        i = pl.program_id(0)
        j = pl.program_id(1)

        @pl.when(j == 0)
        def _():
            out_ref[...] = jnp.zeros(out_ref.shape, out_ref.dtype)

        # Global tile this program *believes* it is processing.  The index_map clamps
        # duplicated tail tiles (odd tile count split across 2 cores) onto a valid
        # block; rows_left <= 0 below then zeroes their whole contribution.
        tile_idx = i * n_inner + j
        rows_left0 = rows_valid - tile_idx * tile_rows

        zeros = jnp.zeros((_SUBLANES, _LANES), jnp.float32)
        acc = (zeros, zeros, zeros)

        if n_full > 0:
            iota_c = lax.broadcasted_iota(jnp.int32, (chunk, _LANES), 0)

            def body(c, carry):
                r0 = pl.multiple_of(c * chunk, chunk)
                o, b, n = _partial(mask_ref, pred_ref, gt_ref, iota_c,
                                   r0, chunk, rows_left0 - c * chunk)
                return (carry[0] + o, carry[1] + b, carry[2] + n)

            acc = lax.fori_loop(0, n_full, body, acc, unroll=True)

        if rem > 0:
            iota_r = lax.broadcasted_iota(jnp.int32, (rem, _LANES), 0)
            o, b, n = _partial(mask_ref, pred_ref, gt_ref, iota_r,
                               n_full * chunk, rem, rows_left0 - n_full * chunk)
            acc = (acc[0] + o, acc[1] + b, acc[2] + n)

        out_ref[0, 0, :, :] += acc[0]     # sum sq where mask
        out_ref[0, 1, :, :] += acc[1]     # sum sq where ~mask
        out_ref[0, 2, :, :] += acc[2]     # count of mask

    return kernel


def masked_mse_loss(mask, y_pred, y_gt, *, tile_rows=4096, n_outer=None):
    """mask: bool array, y_pred / y_gt: float arrays of the same shape.

    Returns scalar f32: mean(sq_err[mask]) + mean(sq_err[~mask]).
    """
    assert mask.shape == y_pred.shape == y_gt.shape
    total = int(mask.size)
    if total == 0:
        return jnp.float32(jnp.nan)

    # Lane-dense (rows, 128) slab.  Pad only to whole (8,128) vregs (and >= 32 rows
    # for tiny inputs so the 1-byte mask keeps a friendly tiling) — NOT to tile
    # alignment: the kernel masks the ragged tail itself.
    rows = -(-total // _LANES)
    rows_p = max(32, _round_up(rows, _SUBLANES))
    pad = rows_p * _LANES - total

    mf = mask.reshape(-1)
    if mf.dtype != jnp.bool_:
        mf = mf != 0
    pf = y_pred.reshape(-1)
    gf = y_gt.reshape(-1)
    if pad:
        # TODO(synk): only taken when total % 1024 != 0 (or tiny inputs); this costs
        # one extra HBM pass.  Zero padding contributes nothing to any accumulated sum.
        mf = jnp.pad(mf, (0, pad))
        pf = jnp.pad(pf, (0, pad))
        gf = jnp.pad(gf, (0, pad))
    mf = mf.reshape(rows_p, _LANES)
    pf = pf.reshape(rows_p, _LANES)
    gf = gf.reshape(rows_p, _LANES)

    # Tile selection: default 4096x128 rows (~4.5 MiB across 3 streams per step) to
    # amortize per-grid-step overhead; clamp to the slab (full extent) for small inputs.
    tr = _round_up(max(32, int(tile_rows)), 32)
    tr = min(tr, rows_p)
    n_tiles = -(-rows_p // tr)

    if n_outer is None:
        n_outer = _default_outer_split()
    n_outer = max(1, min(int(n_outer), n_tiles))
    n_inner = -(-n_tiles // n_outer)
    chunk = min(_CHUNK_ROWS, tr)

    def in_index_map(i, j):
        # Contiguous per-core row ranges; clamp so a (rare) duplicated tail tile never
        # maps to a fully out-of-bounds block.  Its contribution is zeroed in-kernel.
        return (jnp.minimum(i * n_inner + j, n_tiles - 1), 0)

    tile_spec = pl.BlockSpec((tr, _LANES), in_index_map)

    partials = pl.pallas_call(
        _make_kernel(tr, rows_p, n_inner, chunk),
        out_shape=jax.ShapeDtypeStruct((n_outer, 3, _SUBLANES, _LANES), jnp.float32),
        grid_spec=pltpu.PrefetchScalarGridSpec(
            num_scalar_prefetch=0,
            grid=(n_outer, n_inner),
            in_specs=[tile_spec, tile_spec, tile_spec],
            out_specs=pl.BlockSpec((1, 3, _SUBLANES, _LANES),
                                   lambda i, j: (i, 0, 0, 0)),
        ),
        compiler_params=pltpu.CompilerParams(
            dimension_semantics=("parallel", "arbitrary"),
            vmem_limit_bytes=48 * 1024 * 1024,   # headroom under v7x's 64 MiB VMEM
        ),
    )(mf, pf, gf)

    # Tiny final combine (n_outer * 3 * 8 * 128 floats) in plain XLA.
    sums = jnp.sum(partials, axis=(0, 2, 3))
    sum_obj, sum_back, cnt_obj = sums[0], sums[1], sums[2]
    cnt_back = jnp.float32(total) - cnt_obj
    # Empty buckets (all-True / all-False mask) give nan, matching torch .mean() of
    # an empty selection.
    return sum_obj / cnt_obj + sum_back / cnt_back


def _reference(mask, y_pred, y_gt):
    m = mask.astype(jnp.float32)
    sq = (y_pred.astype(jnp.float32) - y_gt.astype(jnp.float32)) ** 2
    loss_obj = jnp.sum(sq * m) / jnp.sum(m)
    loss_back = jnp.sum(sq * (1.0 - m)) / jnp.sum(1.0 - m)
    return loss_obj + loss_back


if __name__ == "__main__":
    key = jax.random.PRNGKey(0)
    k1, k2, k3 = jax.random.split(key, 3)

    # Primary check: NCHW shapes as used by the AAE training script.
    B, C, H, W = 2, 4, 16, 16
    y_pred = jax.random.normal(k1, (B, C, H, W), dtype=jnp.float32)
    y_gt = jax.random.normal(k2, (B, C, H, W), dtype=jnp.float32)
    mask = jax.random.bernoulli(k3, p=0.5, shape=(B, C, H, W))

    loss = jax.block_until_ready(masked_mse_loss(mask, y_pred, y_gt))
    ref = _reference(mask, y_pred, y_gt)
    assert jnp.allclose(loss, ref, rtol=1e-5, atol=1e-5), (loss, ref)

    # Exercise the multi-tile path, the forced 2-way outer split and the clamped
    # duplicate tail tile (odd tile count) with a small tile size.
    k4, k5, k6 = jax.random.split(k1, 3)
    shape2 = (5, 4, 32, 32)              # 20480 elems -> 160 rows -> 5 tiles of 32
    y_pred2 = jax.random.normal(k4, shape2, dtype=jnp.float32)
    y_gt2 = jax.random.normal(k5, shape2, dtype=jnp.float32)
    mask2 = jax.random.bernoulli(k6, p=0.3, shape=shape2)
    loss2 = jax.block_until_ready(
        masked_mse_loss(mask2, y_pred2, y_gt2, tile_rows=32, n_outer=2))
    ref2 = _reference(mask2, y_pred2, y_gt2)
    assert jnp.allclose(loss2, ref2, rtol=1e-5, atol=1e-5), (loss2, ref2)

    # Exercise the non-128-aligned tail (zero-pad-to-vreg path).
    k7, k8, k9 = jax.random.split(k2, 3)
    shape3 = (3, 5, 7, 11)               # 1155 elems, not a multiple of 128
    y_pred3 = jax.random.normal(k7, shape3, dtype=jnp.float32)
    y_gt3 = jax.random.normal(k8, shape3, dtype=jnp.float32)
    mask3 = jax.random.bernoulli(k9, p=0.5, shape=shape3)
    loss3 = jax.block_until_ready(masked_mse_loss(mask3, y_pred3, y_gt3))
    ref3 = _reference(mask3, y_pred3, y_gt3)
    assert jnp.allclose(loss3, ref3, rtol=1e-5, atol=1e-5), (loss3, ref3)

    print("KERNEL_OK")
</pallas_src>

<mosaic_0001>
module attributes {stable_mosaic.version = 11 : i64} {
  func.func @kernel(%arg0: i32, %arg1: i32, %arg2: memref<32x128xi32, #tpu.memory_space<vmem>>, %arg3: memref<32x128xf32, #tpu.memory_space<vmem>>, %arg4: memref<32x128xf32, #tpu.memory_space<vmem>>, %arg5: memref<1x3x8x128xf32, #tpu.memory_space<vmem>>) attributes {dimension_semantics = [#tpu.dimension_semantics<parallel>, #tpu.dimension_semantics<arbitrary>], iteration_bounds = array<i64: 1, 1>, scalar_prefetch = 0 : i64, scratch_operands = 0 : i64, tpu.core_type = #tpu.core_type<tc>, window_params = [{transform_indices = @transform_0, window_bounds = array<i64: 32, 128>}, {transform_indices = @transform_1, window_bounds = array<i64: 32, 128>}, {transform_indices = @transform_2, window_bounds = array<i64: 32, 128>}, {transform_indices = @transform_3, window_bounds = array<i64: 1, 3, 8, 128>}]} {
    %c0_i32 = arith.constant 0 : i32
    %0 = arith.cmpi eq, %arg1, %c0_i32 : i32
    %1 = arith.extui %0 : i1 to i32
    %c0_i32_0 = arith.constant 0 : i32
    %2 = arith.cmpi ne, %1, %c0_i32_0 : i32
    scf.if %2 {
      %cst_37 = arith.constant 0.000000e+00 : f32
      %60 = vector.broadcast %cst_37 : f32 to vector<1x3x8x128xf32>
      %c0_38 = arith.constant 0 : index
      %c0_39 = arith.constant 0 : index
      %c0_40 = arith.constant 0 : index
      %c0_41 = arith.constant 0 : index
      %61 = vector.load %arg5[%c0_38, %c0_39, %c0_40, %c0_41] : memref<1x3x8x128xf32, #tpu.memory_space<vmem>>, vector<1x3x8x128xf32>
      tpu.vector_store %arg5[%c0_38, %c0_39, %c0_40, %c0_41], %60 {strides = array<i32>} : memref<1x3x8x128xf32, #tpu.memory_space<vmem>>, vector<1x3x8x128xf32>,
    } else {
    }
    %c1_i32 = arith.constant 1 : i32
    %3 = arith.muli %arg0, %c1_i32 : i32
    %4 = arith.addi %3, %arg1 : i32
    %c32_i32 = arith.constant 32 : i32
    %5 = arith.muli %4, %c32_i32 : i32
    %c32_i32_1 = arith.constant 32 : i32
    %6 = arith.subi %c32_i32_1, %5 : i32
    %cst = arith.constant 0.000000e+00 : f32
    %7 = vector.broadcast %cst : f32 to vector<8x128xf32>
    %8 = tpu.iota {dimensions = array<i32: 0>} : vector<32x128xi32>
    %c0_i32_2 = arith.constant 0 : i32
    %c32_i32_3 = arith.constant 32 : i32
    %9 = arith.muli %c0_i32_2, %c32_i32_3 : i32
    %10 = tpu.assume_multiple %9, 32 : i32
    %c32_i32_4 = arith.constant 32 : i32
    %11 = arith.muli %c0_i32_2, %c32_i32_4 : i32
    %12 = arith.subi %6, %11 : i32
    %13 = vector.broadcast %12 : i32 to vector<32x128xi32>
    %14 = arith.cmpi slt, %8, %13 : vector<32x128xi32>
    %15 = arith.index_cast %10 : i32 to index
    %c0 = arith.constant 0 : index
    %16 = vector.load %arg2[%15, %c0] : memref<32x128xi32, #tpu.memory_space<vmem>>, vector<32x128xi32>
    %cst_5 = arith.constant dense<0> : vector<32x128xi32>
    %17 = arith.cmpi ne, %16, %cst_5 : vector<32x128xi32>
    %18 = arith.index_cast %10 : i32 to index
    %c0_6 = arith.constant 0 : index
    %19 = vector.load %arg3[%18, %c0_6] : memref<32x128xf32, #tpu.memory_space<vmem>>, vector<32x128xf32>
    %20 = arith.index_cast %10 : i32 to index
    %c0_7 = arith.constant 0 : index
    %21 = vector.load %arg4[%20, %c0_7] : memref<32x128xf32, #tpu.memory_space<vmem>>, vector<32x128xf32>
    %22 = arith.subf %19, %21 : vector<32x128xf32>
    %23 = arith.mulf %22, %22 : vector<32x128xf32>
    %24 = arith.andi %14, %17 : vector<32x128xi1>
    %cst_8 = arith.constant dense<true> : vector<32x128xi1>
    %25 = arith.xori %17, %cst_8 : vector<32x128xi1>
    %26 = arith.andi %14, %25 : vector<32x128xi1>
    %cst_9 = arith.constant 0.000000e+00 : f32
    %27 = vector.broadcast %cst_9 : f32 to vector<32x128xf32>
    %28 = arith.select %24, %23, %27 : vector<32x128xi1>, vector<32x128xf32>
    %cst_10 = arith.constant 0.000000e+00 : f32
    %29 = vector.broadcast %cst_10 : f32 to vector<32x128xf32>
    %30 = arith.select %26, %23, %29 : vector<32x128xi1>, vector<32x128xf32>
    %31 = arith.extui %24 : vector<32x128xi1> to vector<32x128xi32>
    %32 = arith.sitofp %31 : vector<32x128xi32> to vector<32x128xf32>
    %33 = vector.shape_cast %28 : vector<32x128xf32> to vector<4x8x128xf32>
    %cst_11 = arith.constant dense<0.000000e+00> : vector<8x128xf32>
    %34 = vector.multi_reduction <add>, %33, %cst_11 [0] : vector<4x8x128xf32> to vector<8x128xf32>
    %35 = vector.shape_cast %30 : vector<32x128xf32> to vector<4x8x128xf32>
    %cst_12 = arith.constant dense<0.000000e+00> : vector<8x128xf32>
    %36 = vector.multi_reduction <add>, %35, %cst_12 [0] : vector<4x8x128xf32> to vector<8x128xf32>
    %37 = vector.shape_cast %32 : vector<32x128xf32> to vector<4x8x128xf32>
    %cst_13 = arith.constant dense<0.000000e+00> : vector<8x128xf32>
    %38 = vector.multi_reduction <add>, %37, %cst_13 [0] : vector<4x8x128xf32> to vector<8x128xf32>
    %39 = arith.addf %7, %34 : vector<8x128xf32>
    %40 = arith.addf %7, %36 : vector<8x128xf32>
    %41 = arith.addf %7, %38 : vector<8x128xf32>
    %c1_i32_14 = arith.constant 1 : i32
    %c0_15 = arith.constant 0 : index
    %c0_16 = arith.constant 0 : index
    %c0_17 = arith.constant 0 : index
    %c0_18 = arith.constant 0 : index
    %42 = vector.load %arg5[%c0_15, %c0_16, %c0_17, %c0_18] : memref<1x3x8x128xf32, #tpu.memory_space<vmem>>, vector<1x1x8x128xf32>
    %43 = vector.shape_cast %42 : vector<1x1x8x128xf32> to vector<8x128xf32>
    %44 = arith.addf %43, %39 : vector<8x128xf32>
    %c0_19 = arith.constant 0 : index
    %c0_20 = arith.constant 0 : index
    %c0_21 = arith.constant 0 : index
    %c0_22 = arith.constant 0 : index
    %45 = vector.load %arg5[%c0_19, %c0_20, %c0_21, %c0_22] : memref<1x3x8x128xf32, #tpu.memory_space<vmem>>, vector<1x1x8x128xf32>
    %46 = vector.shape_cast %45 : vector<1x1x8x128xf32> to vector<8x128xf32>
    %47 = vector.shape_cast %44 : vector<8x128xf32> to vector<1x1x8x128xf32>
    tpu.vector_store %arg5[%c0_19, %c0_20, %c0_21, %c0_22], %47 {strides = array<i32>} : memref<1x3x8x128xf32, #tpu.memory_space<vmem>>, vector<1x1x8x128xf32>,
    %c0_23 = arith.constant 0 : index
    %c1 = arith.constant 1 : index
    %c0_24 = arith.constant 0 : index
    %c0_25 = arith.constant 0 : index
    %48 = vector.load %arg5[%c0_23, %c1, %c0_24, %c0_25] : memref<1x3x8x128xf32, #tpu.memory_space<vmem>>, vector<1x1x8x128xf32>
    %49 = vector.shape_cast %48 : vector<1x1x8x128xf32> to vector<8x128xf32>
    %50 = arith.addf %49, %40 : vector<8x128xf32>
    %c0_26 = arith.constant 0 : index
    %c1_27 = arith.constant 1 : index
    %c0_28 = arith.constant 0 : index
    %c0_29 = arith.constant 0 : index
    %51 = vector.load %arg5[%c0_26, %c1_27, %c0_28, %c0_29] : memref<1x3x8x128xf32, #tpu.memory_space<vmem>>, vector<1x1x8x128xf32>
    %52 = vector.shape_cast %51 : vector<1x1x8x128xf32> to vector<8x128xf32>
    %53 = vector.shape_cast %50 : vector<8x128xf32> to vector<1x1x8x128xf32>
    tpu.vector_store %arg5[%c0_26, %c1_27, %c0_28, %c0_29], %53 {strides = array<i32>} : memref<1x3x8x128xf32, #tpu.memory_space<vmem>>, vector<1x1x8x128xf32>,
    %c0_30 = arith.constant 0 : index
    %c2 = arith.constant 2 : index
    %c0_31 = arith.constant 0 : index
    %c0_32 = arith.constant 0 : index
    %54 = vector.load %arg5[%c0_30, %c2, %c0_31, %c0_32] : memref<1x3x8x128xf32, #tpu.memory_space<vmem>>, vector<1x1x8x128xf32>
    %55 = vector.shape_cast %54 : vector<1x1x8x128xf32> to vector<8x128xf32>
    %56 = arith.addf %55, %41 : vector<8x128xf32>
    %c0_33 = arith.constant 0 : index
    %c2_34 = arith.constant 2 : index
    %c0_35 = arith.constant 0 : index
    %c0_36 = arith.constant 0 : index
    %57 = vector.load %arg5[%c0_33, %c2_34, %c0_35, %c0_36] : memref<1x3x8x128xf32, #tpu.memory_space<vmem>>, vector<1x1x8x128xf32>
    %58 = vector.shape_cast %57 : vector<1x1x8x128xf32> to vector<8x128xf32>
    %59 = vector.shape_cast %56 : vector<8x128xf32> to vector<1x1x8x128xf32>
    tpu.vector_store %arg5[%c0_33, %c2_34, %c0_35, %c0_36], %59 {strides = array<i32>} : memref<1x3x8x128xf32, #tpu.memory_space<vmem>>, vector<1x1x8x128xf32>,
    return
  }
  func.func @transform_0(%arg0: i32, %arg1: i32) -> (i32, i32) {
    %c1_i32 = arith.constant 1 : i32
    %0 = arith.muli %arg0, %c1_i32 : i32
    %1 = arith.addi %0, %arg1 : i32
    %c0_i32 = arith.constant 0 : i32
    %2 = arith.minsi %1, %c0_i32 : i32
    %c0_i32_0 = arith.constant 0 : i32
    %c0_i32_1 = arith.constant 0 : i32
    return %2, %c0_i32_0 : i32, i32
  }
  func.func @transform_1(%arg0: i32, %arg1: i32) -> (i32, i32) {
    %c1_i32 = arith.constant 1 : i32
    %0 = arith.muli %arg0, %c1_i32 : i32
    %1 = arith.addi %0, %arg1 : i32
    %c0_i32 = arith.constant 0 : i32
    %2 = arith.minsi %1, %c0_i32 : i32
    %c0_i32_0 = arith.constant 0 : i32
    %c0_i32_1 = arith.constant 0 : i32
    return %2, %c0_i32_0 : i32, i32
  }
  func.func @transform_2(%arg0: i32, %arg1: i32) -> (i32, i32) {
    %c1_i32 = arith.constant 1 : i32
    %0 = arith.muli %arg0, %c1_i32 : i32
    %1 = arith.addi %0, %arg1 : i32
    %c0_i32 = arith.constant 0 : i32
    %2 = arith.minsi %1, %c0_i32 : i32
    %c0_i32_0 = arith.constant 0 : i32
    %c0_i32_1 = arith.constant 0 : i32
    return %2, %c0_i32_0 : i32, i32
  }
  func.func @transform_3(%arg0: i32, %arg1: i32) -> (i32, i32, i32, i32) {
    %c0_i32 = arith.constant 0 : i32
    %c0_i32_0 = arith.constant 0 : i32
    %c0_i32_1 = arith.constant 0 : i32
    %c0_i32_2 = arith.constant 0 : i32
    return %arg0, %c0_i32, %c0_i32_0, %c0_i32_1 : i32, i32, i32, i32
  }
}

</mosaic_0001>

<bundles_post_ra>
// kernel: tpu_custom_call.1
= control target key start
LH: loop header
LB: loop body
LE: loop exit
PB: predicated region body
PF: predicated region fallthrough
CT: control target
= control target key end

     0   :  { %8 = vsyncpa [#allocation3], 0  ;;  %s369_s0 = inlined_call_operand.vmem [shape: s32[32,128], index: 0, kind: input, shape index: {}]   ;;  %s370_s1 = inlined_call_operand.vmem [shape: f32[32,128], index: 1, kind: input, shape index: {}]   ;;  %s371_s2 = inlined_call_operand.hbm [shape: f32[32,128], index: 2, kind: input, shape index: {}]   ;;  %s372_s3 = inlined_call_operand.hbm [shape: f32[1,3,8,128], index: 3, kind: output, shape index: {}]  }
   0x1   :  { %9 = vsyncpa [#allocation4], 0  ;;  %s283_s12 = smov [#allocation2]  }
   0x2   :  { %s49_s13 = sshll.u32 %s283_s12, 4  ;;  %s50_s13 = int_to_ptr.vmem [resolvable:$true] %s49_s13 }
   0x3   :  { %s247_s14 = scalar_lea.vmem %s50_s13, 512  ;;  %p252_p1 = scmp.lt.s32.totalorder %s50_s13, %s50_s13 }
   0x4   :  { %p248_p0 = scmp.ne.s32.totalorder %s50_s13, %s247_s14  ;;  %p253_p2 = scmp.lt.s32.totalorder %s247_s14, %s247_s14 }
   0x6   :  { %p254_p3 = por %p253_p2, %p252_p1 }
   0x8   :  { %p255_p4 = pnand %p254_p3, %p248_p0 }
   0xa   :  { %258 = shalt.err (!%p255_p4)
}
   0xb   :  { %s284_s15 = smov 128   ;;  %s285_s16 = smov 8  }
   0xc   :  { %55 = dma.hbm_to_vmem [thread:$0]  %s371_s2, 512, %s50_s13, [#allocation3], %s284_s15, %s284_s15, %s285_s16  }
   0xd   :  { %279 = dma.done.wait [#allocation3], 512  }
   0xe   :  { %280 = vsyncadd [#allocation3], 4294966784  ;;  %v123_v0 = vld [vmem:[%s369_s0] sm:$0xff]  ;;  %v124_v1 = vld [vmem:[%s369_s0 + $0x8] sm:$0xff]  ;;  %v286_v9 = vmov 0.0   ;;  %vm287_vm4 = vmmov 1  }
   0xf   :  { %v125_v2 = vld [vmem:[%s369_s0 + $0x10] sm:$0xff]  ;;  %v126_v3 = vld [vmem:[%s369_s0 + $0x18] sm:$0xff]  ;;  %vm127_vm0 = vcmp.ne.s32.totalorder %v123_v0, 0  ;;  %vm128_vm1 = vcmp.ne.s32.totalorder %v124_v1, 0  ;;  %v131_v4 = vld [vmem:[%s370_s1] sm:$0xff]  ;;  %s288_s0 = smov [#allocation5]  }
  0x10   :  { %vm129_vm2 = vcmp.ne.s32.totalorder %v125_v2, 0  ;;  %v132_v5 = vld [vmem:[%s370_s1 + $0x8] sm:$0xff]  ;;  %vm130_vm3 = vcmp.ne.s32.totalorder %v126_v3, 0  ;;  %v133_v6 = vld [vmem:[%s370_s1 + $0x10] sm:$0xff]  ;;  %v134_v7 = vld [vmem:[%s370_s1 + $0x18] sm:$0xff]  ;;  %v229_v10 = vsel %vm127_vm0, 1.0, %v286_v9 }
  0x11   :  { %v135_v8 = vld [vmem:[#allocation2] sm:$0xff]  ;;  %v230_v11 = vsel %vm128_vm1, 1.0, %v286_v9  ;;  %v136_v12 = vld [vmem:[#allocation2 + $0x8] sm:$0xff]  ;;  %v137_v13 = vld [vmem:[#allocation2 + $0x10] sm:$0xff]  ;;  %v231_v16 = vsel %vm129_vm2, 1.0, %v286_v9  ;;  %v232_v22 = vsel %vm130_vm3, 1.0, %v286_v9 }
  0x12   :  { %v138_v14 = vld [vmem:[#allocation2 + $0x18] sm:$0xff]  ;;  %v139_v15 = vsub.f32 %v131_v4, %v135_v8  ;;  %v181_v17 = vadd.f32 %v230_v11, %v229_v10  ;;  %v140_v18 = vsub.f32 %v132_v5, %v136_v12  ;;  %v141_v19 = vsub.f32 %v133_v6, %v137_v13  ;;  %vm343_vm5 = vmxor %vm127_vm0, %vm287_vm4  ;;  %s203_s1 = sshll.u32 %s288_s0, 4  ;;  %s204_s1 = int_to_ptr.vmem [resolvable:$true] %s203_s1 }
  0x13   :  { %v142_v20 = vsub.f32 %v134_v7, %v138_v14  ;;  %vm152_vm6 = vmxor %vm128_vm1, %vm287_vm4  ;;  %s259_s7 = scalar_lea.vmem %s204_s1, 384  ;;  %p264_p6 = scmp.lt.s32.totalorder %s204_s1, %s204_s1 }
  0x14   :  { %v143_v23 = vmul.f32 %v139_v15, %v139_v15  ;;  %v182_v24 = vadd.f32 %v231_v16, %v181_v17  ;;  %v144_v25 = vmul.f32 %v140_v18, %v140_v18  ;;  %v145_v26 = vmul.f32 %v141_v19, %v141_v19  ;;  %vm153_vm7 = vmxor %vm129_vm2, %vm287_vm4  ;;  %p260_p5 = scmp.ne.s32.totalorder %s204_s1, %s259_s7  ;;  %p265_p7 = scmp.lt.s32.totalorder %s259_s7, %s259_s7 }
  0x15   :  { %v146_v27 = vmul.f32 %v142_v20, %v142_v20  ;;  %vm352_vm8 = vmxor %vm130_vm3, %vm287_vm4 }
  0x16   :  { %v159_v28 = vsel %vm127_vm0, %v143_v23, 0.0  ;;  %v163_v30 = vsel %vm343_vm5, %v143_v23, 0.0  ;;  %v183_v31 = vadd.f32 %v232_v22, %v182_v24  ;;  %v160_v32 = vsel %vm128_vm1, %v144_v25, 0.0  ;;  %p266_p8 = por %p265_p7, %p264_p6 }
  0x17   :  { %v161_v33 = vsel %vm129_vm2, %v145_v26, 0.0  ;;  %v164_v34 = vsel %vm152_vm6, %v144_v25, 0.0  ;;  %v175_v35 = vadd.f32 %v160_v32, %v159_v28  ;;  %v165_v36 = vsel %vm153_vm7, %v145_v26, 0.0 }
  0x18   :  { %v178_v37 = vadd.f32 %v164_v34, %v163_v30  ;;  %v162_v38 = vsel %vm130_vm3, %v146_v27, 0.0  ;;  %v166_v39 = vsel %vm352_vm8, %v146_v27, 0.0  ;;  %197 = vst [vmem:[#allocation5 + $0x10] sm:$0xff] %v183_v31  ;;  %p267_p9 = pnand %p266_p8, %p260_p5 }
  0x19   :  { %v176_v40 = vadd.f32 %v175_v35, %v161_v33 }
  0x1a   :  { %v179_v41 = vadd.f32 %v178_v37, %v165_v36 }
  0x1b   :  { %v177_v42 = vadd.f32 %v176_v40, %v162_v38 }
  0x1c   :  { %v180_v43 = vadd.f32 %v179_v41, %v166_v39 }
  0x1d   :  { %189 = vst [vmem:[#allocation5] sm:$0xff] %v177_v42 }
  0x1e   :  { %193 = vst [vmem:[#allocation5 + $0x8] sm:$0xff] %v180_v43 }
  0x1f   :  { %270 = shalt.err (!%p267_p9)
}
  0x20   :  { %209 = dma.vmem_to_hbm [thread:$0]  %s204_s1, 384, %s372_s3, [#allocation4], %s284_s15, %s284_s15, %s285_s16  }
  0x21   :  { %281 = dma.done.wait [#allocation4], 384  }
  0x22   :  { %282 = vsyncadd [#allocation4], 4294966912 }
  0x23   :  { %213 = vsyncpa [#allocation3], 1 }
  0x24   :  { %214 = vsyncpa [#allocation4], 1 }

</bundles_post_ra>
